<compile_context>
chip_gen: v7x
topology: tpu7x:2x2x1
jax: 0.10.0
libtpu: 0.0.40
codegen_flags: <defaults>
</compile_context>

<pallas_src>
import functools

import jax
import jax.numpy as jnp
from jax import lax
from jax.experimental import pallas as pl
from jax.experimental.pallas import tpu as pltpu


def _round_up(x, m):
    return (x + m - 1) // m * m


def _vmem_capacity_bytes():
    try:
        return int(pltpu.get_tpu_info().vmem_capacity_bytes)
    except Exception:
        return 64 << 20  # conservative: v7x per-core VMEM


# ----------------------------- Pallas kernel ---------------------------------
def _patchgan_kernel(x_ref, w_ref, m_ref, o_ref, *,
                     offs, cb, n_groups, inv_cnt, eps, neg_slope):
    """One (batch image, Cout group) step: 4 shifted matmuls + InstanceNorm + leaky ReLU.

    x_ref : (1, 4*Cin, S_in)  compute dtype -- space-to-depth input, spatially flat+padded
    w_ref : (4, Cout, 4*Cin)  compute dtype -- whole weight, resident (constant index_map)
    m_ref : (1, P)            f32           -- 1.0 at valid output positions, else 0.0
    o_ref : (1, cb, P)        f32           -- output block; also the conv accumulator
    """
    P = o_ref.shape[-1]
    x = x_ref[0]                                       # (4*Cin, S_in): one VMEM load

    def w_tap(t):
        if n_groups == 1:
            return w_ref[t]                            # (Cout, 4*Cin)
        g = pl.program_id(1)
        row0 = pl.multiple_of(g * cb, 8)               # cb alignment guaranteed by wrapper
        return w_ref[t, pl.ds(row0, cb), :]            # (cb, 4*Cin)

    # Conv as 4 lane-shifted matmuls on the MXU, accumulated in f32 directly in o_ref.
    o_ref[0] = jnp.dot(w_tap(0), x[:, offs[0]:offs[0] + P],
                       preferred_element_type=jnp.float32)
    for t in range(1, 4):
        o_ref[0] += jnp.dot(w_tap(t), x[:, offs[t]:offs[t] + P],
                            preferred_element_type=jnp.float32)

    # InstanceNorm2d (no affine, biased variance) over the valid spatial positions,
    # then leaky_relu (PyTorch default slope 0.01).  Finalized in place.
    y = o_ref[0]                                       # (cb, P) f32
    m = m_ref[...]                                     # (1, P)  f32
    mean = jnp.sum(y * m, axis=1, keepdims=True) * inv_cnt
    ctr = y - mean
    var = jnp.sum(ctr * ctr * m, axis=1, keepdims=True) * inv_cnt
    y_n = ctr * lax.rsqrt(var + eps)
    o_ref[0] = jnp.where(y_n >= 0, y_n, neg_slope * y_n).astype(o_ref.dtype)


# ------------------------------ host wrapper ----------------------------------
def patchgan_block(x_nchw, weight_oihw, bias=None, *, eps=1e-5,
                   negative_slope=0.01, compute_dtype=jnp.bfloat16):
    """Forward of PatchGANBlock (Conv2d k4 s2 -> InstanceNorm2d -> leaky_relu).

    `bias` is accepted for parameter parity with nn.Conv2d but unused: affine-free
    InstanceNorm subtracts the per-(n, c) spatial mean, which cancels it exactly.
    """
    del bias  # mathematically cancelled by InstanceNorm2d(affine=False)

    N, C, H, W = x_nchw.shape
    C_out = weight_oihw.shape[0]
    Ho = (H - 4) // 2 + 1
    Wo = (W - 4) // 2 + 1
    Hh, Wh = Ho + 1, Wo + 1            # 2x2 cell grid actually read by the conv
    S = Hh * Wh                        # flattened cell-grid size
    P = _round_up(S, 128)              # lane-dense output spatial length
    S_in = P + Wh + 1                  # input length incl. room for the 4 shifts
    K4 = 4 * C

    # ---- host prep (no data inflation): space-to-depth + flatten spatial ----
    xq = x_nchw.astype(compute_dtype)[:, :, :2 * Hh, :2 * Wh]
    xq = xq.reshape(N, C, Hh, 2, Wh, 2)                # (n, c, hi, pi, wi, pj)
    xq = jnp.transpose(xq, (0, 3, 5, 1, 2, 4))         # (n, pi, pj, c, hi, wi)
    xq = xq.reshape(N, K4, S)
    xq = jnp.pad(xq, ((0, 0), (0, 0), (0, S_in - S)))

    # weight (Cout, Cin, 4, 4) -> (4 taps, Cout, 4*Cin); tap t=(qi,qj) pairs with the
    # lane shift offs[t] = qi*Wh + qj on the flattened cell grid.
    wr = weight_oihw.astype(compute_dtype).reshape(C_out, C, 2, 2, 2, 2)  # o c qi pi qj pj
    wq = jnp.transpose(wr, (2, 4, 0, 3, 5, 1)).reshape(4, C_out, K4)      # (qi,qj) o (pi,pj,c)
    offs = (0, 1, Wh, Wh + 1)

    # valid output positions on the flattened (Hh, Wh) cell grid
    col = jnp.arange(P, dtype=jnp.int32)
    valid = (col < Ho * Wh) & ((col % Wh) < Wo)
    mask = valid.astype(jnp.float32).reshape(1, P)

    # Cout split: 2nd "parallel" grid axis so both v7x TensorCores work at N == 1.
    itemsize = jnp.dtype(compute_dtype).itemsize
    sub = 8 * 4 // itemsize            # sublane packing (8 for f32, 16 for bf16)
    G = 2 if (C_out % (2 * sub) == 0) else 1
    Cb = C_out // G

    # ---- scoped-VMEM sizing: real block footprint, per-generation cap ----
    x_blk = K4 * S_in * itemsize
    w_blk = 4 * C_out * K4 * itemsize
    m_blk = P * 4
    o_blk = Cb * P * 4
    need = 2 * (x_blk + w_blk + m_blk + o_blk) + x_blk + 6 * o_blk + (8 << 20)
    cap = _vmem_capacity_bytes() * 3 // 5             # ~38 MiB on v7x, ~76 MiB on v5e/v6e
    vmem_limit = max(min(max(need, 32 << 20), cap), need)   # never below what blocks need

    kernel = functools.partial(
        _patchgan_kernel, offs=offs, cb=Cb, n_groups=G,
        inv_cnt=1.0 / float(Ho * Wo), eps=float(eps),
        neg_slope=float(negative_slope))

    out = pl.pallas_call(
        kernel,
        out_shape=jax.ShapeDtypeStruct((N, C_out, P), jnp.float32),
        grid_spec=pltpu.PrefetchScalarGridSpec(
            num_scalar_prefetch=0,
            grid=(N, G),
            in_specs=[
                pl.BlockSpec((1, K4, S_in), lambda n, g: (n, 0, 0)),    # per-image input
                pl.BlockSpec((4, C_out, K4), lambda n, g: (0, 0, 0)),   # resident weight
                pl.BlockSpec((1, P), lambda n, g: (0, 0)),              # resident mask
            ],
            out_specs=pl.BlockSpec((1, Cb, P), lambda n, g: (n, g, 0)),
        ),
        compiler_params=pltpu.CompilerParams(
            dimension_semantics=("parallel", "parallel"),
            vmem_limit_bytes=int(vmem_limit),
        ),
    )(xq, wq, mask)

    # (N, Cout, P) with the cell grid flat on lanes -> crop to the valid (Ho, Wo) NCHW.
    return out[:, :, :S].reshape(N, C_out, Hh, Wh)[:, :, :Ho, :Wo]


# ------------------------------ reference -------------------------------------
def patchgan_block_ref(x_nchw, weight_oihw, bias, eps=1e-5, negative_slope=0.01):
    y = lax.conv_general_dilated(
        x_nchw.astype(jnp.float32), weight_oihw.astype(jnp.float32),
        window_strides=(2, 2), padding="VALID",
        dimension_numbers=("NCHW", "OIHW", "NCHW"))
    y = y + bias.reshape(1, -1, 1, 1)
    mean = jnp.mean(y, axis=(2, 3), keepdims=True)
    var = jnp.mean((y - mean) ** 2, axis=(2, 3), keepdims=True)
    y = (y - mean) * lax.rsqrt(var + eps)
    return jnp.where(y >= 0, y, negative_slope * y)


if __name__ == "__main__":
    key = jax.random.PRNGKey(0)
    k_x, k_w, k_b, k_x2, k_w2 = jax.random.split(key, 5)

    # Case 1: N=2, C_in=4, 16x16 -> 7x7, C_out=8 (single Cout group).
    N, C_in, H, W, C_out = 2, 4, 16, 16, 8
    x = jax.random.normal(k_x, (N, C_in, H, W), jnp.float32)
    w = 0.1 * jax.random.normal(k_w, (C_out, C_in, 4, 4), jnp.float32)
    b = 0.1 * jax.random.normal(k_b, (C_out,), jnp.float32)
    ref = patchgan_block_ref(x, w, b)

    # f32 path: bit-faithful to the PyTorch math (bias cancellation is exact).
    out_f32 = jax.block_until_ready(patchgan_block(x, w, b, compute_dtype=jnp.float32))
    assert out_f32.shape == ref.shape == (N, C_out, 7, 7)
    assert jnp.allclose(out_f32, ref, atol=1e-4, rtol=1e-4), \
        float(jnp.max(jnp.abs(out_f32 - ref)))

    # Default bf16-streamed path (f32 MXU accumulation): halves HBM read traffic.
    out_bf16 = jax.block_until_ready(patchgan_block(x, w, b))
    assert out_bf16.shape == ref.shape
    assert jnp.allclose(out_bf16, ref, atol=1e-1, rtol=1e-1), \
        float(jnp.max(jnp.abs(out_bf16 - ref)))

    # Case 2: batch-1, C_in=3, 18x18 -> 8x8, C_out=16: exercises the Cout-split grid
    # (two "parallel" groups) and the in-kernel pl.ds slice of the resident weight.
    x2 = jax.random.normal(k_x2, (1, 3, 18, 18), jnp.float32)
    w2 = 0.1 * jax.random.normal(k_w2, (16, 3, 4, 4), jnp.float32)
    b2 = jnp.zeros((16,), jnp.float32)
    ref2 = patchgan_block_ref(x2, w2, b2)
    out2 = jax.block_until_ready(patchgan_block(x2, w2, b2, compute_dtype=jnp.float32))
    assert out2.shape == ref2.shape == (1, 16, 8, 8)
    assert jnp.allclose(out2, ref2, atol=1e-4, rtol=1e-4), \
        float(jnp.max(jnp.abs(out2 - ref2)))

    print("KERNEL_OK")
</pallas_src>

<mosaic_0001>
module attributes {stable_mosaic.version = 11 : i64} {
  func.func @_patchgan_kernel(%arg0: i32, %arg1: i32, %arg2: memref<1x16x137xf32, #tpu.memory_space<vmem>>, %arg3: memref<4x8x16xf32, #tpu.memory_space<vmem>>, %arg4: memref<1x128xf32, #tpu.memory_space<vmem>>, %arg5: memref<1x8x128xf32, #tpu.memory_space<vmem>>) attributes {dimension_semantics = [#tpu.dimension_semantics<parallel>, #tpu.dimension_semantics<parallel>], iteration_bounds = array<i64: 2, 1>, scalar_prefetch = 0 : i64, scratch_operands = 0 : i64, tpu.core_type = #tpu.core_type<tc>, window_params = [{transform_indices = @transform_0, window_bounds = array<i64: 1, 16, 137>}, {pipeline_mode = #tpu.pipeline_mode<synchronous>, transform_indices = @transform_1, window_bounds = array<i64: 4, 8, 16>}, {pipeline_mode = #tpu.pipeline_mode<synchronous>, transform_indices = @transform_2, window_bounds = array<i64: 1, 128>}, {transform_indices = @transform_3, window_bounds = array<i64: 1, 8, 128>}]} {
    %c0 = arith.constant 0 : index
    %c0_0 = arith.constant 0 : index
    %c0_1 = arith.constant 0 : index
    %0 = vector.load %arg2[%c0, %c0_0, %c0_1] : memref<1x16x137xf32, #tpu.memory_space<vmem>>, vector<1x16x137xf32>
    %1 = vector.shape_cast %0 : vector<1x16x137xf32> to vector<16x137xf32>
    %c0_2 = arith.constant 0 : index
    %c0_3 = arith.constant 0 : index
    %c0_4 = arith.constant 0 : index
    %2 = vector.load %arg3[%c0_2, %c0_3, %c0_4] : memref<4x8x16xf32, #tpu.memory_space<vmem>>, vector<1x8x16xf32>
    %3 = vector.shape_cast %2 : vector<1x8x16xf32> to vector<8x16xf32>
    %4 = vector.extract_strided_slice %1 {offsets = [0, 0], sizes = [16, 128], strides = [1, 1]} : vector<16x137xf32> to vector<16x128xf32>
    %cst = arith.constant dense<0.000000e+00> : vector<8x128xf32>
    %5 = tpu.matmul %3, %4, %cst {dimension_numbers = #tpu.dot_dimension_numbers<[1], [0], [0], [1], [0, 0, 1, 1], [], []>} : vector<8x16xf32>, vector<16x128xf32>, vector<8x128xf32> -> vector<8x128xf32>
    %c0_5 = arith.constant 0 : index
    %c0_6 = arith.constant 0 : index
    %c0_7 = arith.constant 0 : index
    %6 = vector.load %arg5[%c0_5, %c0_6, %c0_7] : memref<1x8x128xf32, #tpu.memory_space<vmem>>, vector<1x8x128xf32>
    %7 = vector.shape_cast %6 : vector<1x8x128xf32> to vector<8x128xf32>
    %8 = vector.shape_cast %5 : vector<8x128xf32> to vector<1x8x128xf32>
    tpu.vector_store %arg5[%c0_5, %c0_6, %c0_7], %8 {strides = array<i32>} : memref<1x8x128xf32, #tpu.memory_space<vmem>>, vector<1x8x128xf32>,
    %c0_8 = arith.constant 0 : index
    %c0_9 = arith.constant 0 : index
    %c0_10 = arith.constant 0 : index
    %9 = vector.load %arg5[%c0_8, %c0_9, %c0_10] : memref<1x8x128xf32, #tpu.memory_space<vmem>>, vector<1x8x128xf32>
    %10 = vector.shape_cast %9 : vector<1x8x128xf32> to vector<8x128xf32>
    %c1 = arith.constant 1 : index
    %c0_11 = arith.constant 0 : index
    %c0_12 = arith.constant 0 : index
    %11 = vector.load %arg3[%c1, %c0_11, %c0_12] : memref<4x8x16xf32, #tpu.memory_space<vmem>>, vector<1x8x16xf32>
    %12 = vector.shape_cast %11 : vector<1x8x16xf32> to vector<8x16xf32>
    %13 = vector.extract_strided_slice %1 {offsets = [0, 1], sizes = [16, 128], strides = [1, 1]} : vector<16x137xf32> to vector<16x128xf32>
    %cst_13 = arith.constant dense<0.000000e+00> : vector<8x128xf32>
    %14 = tpu.matmul %12, %13, %cst_13 {dimension_numbers = #tpu.dot_dimension_numbers<[1], [0], [0], [1], [0, 0, 1, 1], [], []>} : vector<8x16xf32>, vector<16x128xf32>, vector<8x128xf32> -> vector<8x128xf32>
    %15 = arith.addf %10, %14 : vector<8x128xf32>
    %c0_14 = arith.constant 0 : index
    %c0_15 = arith.constant 0 : index
    %c0_16 = arith.constant 0 : index
    %16 = vector.load %arg5[%c0_14, %c0_15, %c0_16] : memref<1x8x128xf32, #tpu.memory_space<vmem>>, vector<1x8x128xf32>
    %17 = vector.shape_cast %16 : vector<1x8x128xf32> to vector<8x128xf32>
    %18 = vector.shape_cast %15 : vector<8x128xf32> to vector<1x8x128xf32>
    tpu.vector_store %arg5[%c0_14, %c0_15, %c0_16], %18 {strides = array<i32>} : memref<1x8x128xf32, #tpu.memory_space<vmem>>, vector<1x8x128xf32>,
    %c0_17 = arith.constant 0 : index
    %c0_18 = arith.constant 0 : index
    %c0_19 = arith.constant 0 : index
    %19 = vector.load %arg5[%c0_17, %c0_18, %c0_19] : memref<1x8x128xf32, #tpu.memory_space<vmem>>, vector<1x8x128xf32>
    %20 = vector.shape_cast %19 : vector<1x8x128xf32> to vector<8x128xf32>
    %c2 = arith.constant 2 : index
    %c0_20 = arith.constant 0 : index
    %c0_21 = arith.constant 0 : index
    %21 = vector.load %arg3[%c2, %c0_20, %c0_21] : memref<4x8x16xf32, #tpu.memory_space<vmem>>, vector<1x8x16xf32>
    %22 = vector.shape_cast %21 : vector<1x8x16xf32> to vector<8x16xf32>
    %23 = vector.extract_strided_slice %1 {offsets = [0, 8], sizes = [16, 128], strides = [1, 1]} : vector<16x137xf32> to vector<16x128xf32>
    %cst_22 = arith.constant dense<0.000000e+00> : vector<8x128xf32>
    %24 = tpu.matmul %22, %23, %cst_22 {dimension_numbers = #tpu.dot_dimension_numbers<[1], [0], [0], [1], [0, 0, 1, 1], [], []>} : vector<8x16xf32>, vector<16x128xf32>, vector<8x128xf32> -> vector<8x128xf32>
    %25 = arith.addf %20, %24 : vector<8x128xf32>
    %c0_23 = arith.constant 0 : index
    %c0_24 = arith.constant 0 : index
    %c0_25 = arith.constant 0 : index
    %26 = vector.load %arg5[%c0_23, %c0_24, %c0_25] : memref<1x8x128xf32, #tpu.memory_space<vmem>>, vector<1x8x128xf32>
    %27 = vector.shape_cast %26 : vector<1x8x128xf32> to vector<8x128xf32>
    %28 = vector.shape_cast %25 : vector<8x128xf32> to vector<1x8x128xf32>
    tpu.vector_store %arg5[%c0_23, %c0_24, %c0_25], %28 {strides = array<i32>} : memref<1x8x128xf32, #tpu.memory_space<vmem>>, vector<1x8x128xf32>,
    %c0_26 = arith.constant 0 : index
    %c0_27 = arith.constant 0 : index
    %c0_28 = arith.constant 0 : index
    %29 = vector.load %arg5[%c0_26, %c0_27, %c0_28] : memref<1x8x128xf32, #tpu.memory_space<vmem>>, vector<1x8x128xf32>
    %30 = vector.shape_cast %29 : vector<1x8x128xf32> to vector<8x128xf32>
    %c3 = arith.constant 3 : index
    %c0_29 = arith.constant 0 : index
    %c0_30 = arith.constant 0 : index
    %31 = vector.load %arg3[%c3, %c0_29, %c0_30] : memref<4x8x16xf32, #tpu.memory_space<vmem>>, vector<1x8x16xf32>
    %32 = vector.shape_cast %31 : vector<1x8x16xf32> to vector<8x16xf32>
    %33 = vector.extract_strided_slice %1 {offsets = [0, 9], sizes = [16, 128], strides = [1, 1]} : vector<16x137xf32> to vector<16x128xf32>
    %cst_31 = arith.constant dense<0.000000e+00> : vector<8x128xf32>
    %34 = tpu.matmul %32, %33, %cst_31 {dimension_numbers = #tpu.dot_dimension_numbers<[1], [0], [0], [1], [0, 0, 1, 1], [], []>} : vector<8x16xf32>, vector<16x128xf32>, vector<8x128xf32> -> vector<8x128xf32>
    %35 = arith.addf %30, %34 : vector<8x128xf32>
    %c0_32 = arith.constant 0 : index
    %c0_33 = arith.constant 0 : index
    %c0_34 = arith.constant 0 : index
    %36 = vector.load %arg5[%c0_32, %c0_33, %c0_34] : memref<1x8x128xf32, #tpu.memory_space<vmem>>, vector<1x8x128xf32>
    %37 = vector.shape_cast %36 : vector<1x8x128xf32> to vector<8x128xf32>
    %38 = vector.shape_cast %35 : vector<8x128xf32> to vector<1x8x128xf32>
    tpu.vector_store %arg5[%c0_32, %c0_33, %c0_34], %38 {strides = array<i32>} : memref<1x8x128xf32, #tpu.memory_space<vmem>>, vector<1x8x128xf32>,
    %c0_35 = arith.constant 0 : index
    %c0_36 = arith.constant 0 : index
    %c0_37 = arith.constant 0 : index
    %39 = vector.load %arg5[%c0_35, %c0_36, %c0_37] : memref<1x8x128xf32, #tpu.memory_space<vmem>>, vector<1x8x128xf32>
    %40 = vector.shape_cast %39 : vector<1x8x128xf32> to vector<8x128xf32>
    %c0_38 = arith.constant 0 : index
    %c0_39 = arith.constant 0 : index
    %41 = vector.load %arg4[%c0_38, %c0_39] : memref<1x128xf32, #tpu.memory_space<vmem>>, vector<1x128xf32>
    %42 = vector.broadcast %41 : vector<1x128xf32> to vector<8x128xf32>
    %43 = arith.mulf %40, %42 : vector<8x128xf32>
    %cst_40 = arith.constant dense<0.000000e+00> : vector<8xf32>
    %44 = vector.multi_reduction <add>, %43, %cst_40 [1] : vector<8x128xf32> to vector<8xf32>
    %45 = vector.shape_cast %44 : vector<8xf32> to vector<8x1xf32>
    %cst_41 = arith.constant 0.0204081628 : f32
    %46 = vector.broadcast %cst_41 : f32 to vector<8x1xf32>
    %47 = arith.mulf %45, %46 : vector<8x1xf32>
    %48 = vector.broadcast %47 : vector<8x1xf32> to vector<8x128xf32>
    %49 = arith.subf %40, %48 : vector<8x128xf32>
    %50 = arith.mulf %49, %49 : vector<8x128xf32>
    %51 = vector.broadcast %41 : vector<1x128xf32> to vector<8x128xf32>
    %52 = arith.mulf %50, %51 : vector<8x128xf32>
    %cst_42 = arith.constant dense<0.000000e+00> : vector<8xf32>
    %53 = vector.multi_reduction <add>, %52, %cst_42 [1] : vector<8x128xf32> to vector<8xf32>
    %54 = vector.shape_cast %53 : vector<8xf32> to vector<8x1xf32>
    %cst_43 = arith.constant 0.0204081628 : f32
    %55 = vector.broadcast %cst_43 : f32 to vector<8x1xf32>
    %56 = arith.mulf %54, %55 : vector<8x1xf32>
    %cst_44 = arith.constant 9.99999974E-6 : f32
    %57 = vector.broadcast %cst_44 : f32 to vector<8x1xf32>
    %58 = arith.addf %56, %57 : vector<8x1xf32>
    %59 = math.rsqrt %58 : vector<8x1xf32>
    %60 = vector.broadcast %59 : vector<8x1xf32> to vector<8x128xf32>
    %61 = arith.mulf %49, %60 : vector<8x128xf32>
    %cst_45 = arith.constant 0.000000e+00 : f32
    %62 = vector.broadcast %cst_45 : f32 to vector<8x128xf32>
    %63 = arith.cmpf oge, %61, %62 : vector<8x128xf32>
    %cst_46 = arith.constant 0.00999999977 : f32
    %64 = vector.broadcast %cst_46 : f32 to vector<8x128xf32>
    %65 = arith.mulf %64, %61 : vector<8x128xf32>
    %66 = arith.select %63, %61, %65 : vector<8x128xi1>, vector<8x128xf32>
    %c0_47 = arith.constant 0 : index
    %c0_48 = arith.constant 0 : index
    %c0_49 = arith.constant 0 : index
    %67 = vector.load %arg5[%c0_47, %c0_48, %c0_49] : memref<1x8x128xf32, #tpu.memory_space<vmem>>, vector<1x8x128xf32>
    %68 = vector.shape_cast %67 : vector<1x8x128xf32> to vector<8x128xf32>
    %69 = vector.shape_cast %66 : vector<8x128xf32> to vector<1x8x128xf32>
    tpu.vector_store %arg5[%c0_47, %c0_48, %c0_49], %69 {strides = array<i32>} : memref<1x8x128xf32, #tpu.memory_space<vmem>>, vector<1x8x128xf32>,
    return
  }
  func.func @transform_0(%arg0: i32, %arg1: i32) -> (i32, i32, i32) {
    %c0_i32 = arith.constant 0 : i32
    %c0_i32_0 = arith.constant 0 : i32
    %c0_i32_1 = arith.constant 0 : i32
    return %arg0, %c0_i32, %c0_i32_0 : i32, i32, i32
  }
  func.func @transform_1(%arg0: i32, %arg1: i32) -> (i32, i32, i32) {
    %c0_i32 = arith.constant 0 : i32
    %c0_i32_0 = arith.constant 0 : i32
    %c0_i32_1 = arith.constant 0 : i32
    %c0_i32_2 = arith.constant 0 : i32
    return %c0_i32, %c0_i32_0, %c0_i32_1 : i32, i32, i32
  }
  func.func @transform_2(%arg0: i32, %arg1: i32) -> (i32, i32) {
    %c0_i32 = arith.constant 0 : i32
    %c0_i32_0 = arith.constant 0 : i32
    %c0_i32_1 = arith.constant 0 : i32
    return %c0_i32, %c0_i32_0 : i32, i32
  }
  func.func @transform_3(%arg0: i32, %arg1: i32) -> (i32, i32, i32) {
    %c0_i32 = arith.constant 0 : i32
    %c0_i32_0 = arith.constant 0 : i32
    return %arg0, %arg1, %c0_i32 : i32, i32, i32
  }
}

</mosaic_0001>

<bundles_post_ra>
// kernel: tpu_custom_call.1
= control target key start
LH: loop header
LB: loop body
LE: loop exit
PB: predicated region body
PF: predicated region fallthrough
CT: control target
= control target key end

     0   :  { %8 = vsyncpa [#allocation3], 0  ;;  %s1316_s0 = inlined_call_operand.hbm [shape: f32[2,16,137], index: 0, kind: input, shape index: {}]   ;;  %s1317_s1 = inlined_call_operand.hbm [shape: f32[4,8,16], index: 1, kind: input, shape index: {}]   ;;  %s1318_s2 = inlined_call_operand.vmem [shape: f32[1,128], index: 2, kind: input, shape index: {}]   ;;  %s1319_s3 = inlined_call_operand.hbm [shape: f32[2,8,128], index: 3, kind: output, shape index: {}]  }
   0x1   :  { %10 = vsyncpa [#allocation3 + $0x1], 0 }
   0x2   :  { %11 = vsyncpa [#allocation6], 0 }
   0x3   :  { %12 = vsyncpa [#allocation4], 0 }
   0x4   :  { %14 = vsyncpa [#allocation4 + $0x1], 0  ;;  %s1079_s12 = smov 0   ;;  %s1081_s13 = smov 0  }
   0x5   :  { %s1083_s14 = smov 0   ;;  %s1085_s15 = smov 0  }
   0x6   :  { %s1087_s16 = smov 0   ;;  %s1089_s17 = smov 0  }
   0x7 LB: > { %s704_s18 = sadd.s32 4294967295, %s1044_s17   ;;  %s705_s19 = sadd.s32 4294967294, %s1044_s17   ;;  %s1044_s17 = sphi %s1089_s17, %s20_s17   ;;  %s1040_s16 = sphi %s1087_s16, %s1343_s16   ;;  %s1036_s15 = sphi %s1085_s15, %s1342_s15   ;;  %s1032_s14 = sphi %s1083_s14, %s1341_s14   ;;  %s1028_s13 = sphi %s1081_s13, %s1340_s13   ;;  %s1024_s12 = sphi %s1079_s12, %s1339_s12  }
   0x8   : > { %p52_p0 = scmp.ne.s32.totalorder %s1028_s13, %s1024_s12  ;;  %p1113_p1 = scmp.eq.s32.totalorder %s704_s18, 0 }
   0x9   : > { %p1117_p2 = scmp.eq.s32.totalorder %s704_s18, 1  ;;  %p126_p3 = scmp.eq.s32.totalorder %s705_s19, 1 }
   0xa   : > { %s1324_s20 = scalar_select %p1113_p1, 1, 0 }
   0xb   : > { %s1325_s21 = scalar_select %p1117_p2, 1, 0 }
   0xc   : > { %p1123_p4 = por %p1113_p1, %p52_p0  ;;  %p706_p5 = scmp.ge.s32.totalorder %s1044_s17, 1 }
   0xd   : > { %p1128_p6 = por %p126_p3, %p52_p0  ;;  %p133_p7 = scmp.lt.s32.totalorder %s1044_s17, 3 }
   0xe   : > { %s1326_s22 = scalar_select %p1123_p4, 1, 0 }
   0xf   : > { %s1327_s23 = scalar_select %p1128_p6, 1, 0 }
  0x10   : > { %p1133_p8 = pnand %p706_p5, %p133_p7  ;;  %s1046_s25 = smov [#allocation5]  }
  0x11   : > { %s145_s26 = sshll.u32 %s1046_s25, 4  ;;  %s32_s28 = sadd.s32 1, %s1040_s16  ;;  %s146_s26 = int_to_ptr.vmem [resolvable:$true] %s145_s26 }
  0x12   : > { %s1328_s24 = scalar_select %p1133_p8, 1, 0 }
  0x13   : > { %p793_p9 = pneg %p1133_p8  ;;  %s900_s4 = scalar_lea.hbm %s1317_s1, 512 }
  0x14   : > { %p901_p12 = scmp.ne.s32.totalorder %s1317_s1, %s900_s4  ;;  %p907_p5 = scmp.lt.u32.totalorder %s900_s4, %s1317_s1 }
  0x15   : > { %p1142_p11 = pnand %p793_p9, %p1113_p1 }
  0x17   : > { %p902_p13 = pneg %p1142_p11 }
  0x19   : > { %p903_p0 = pnand %p902_p13, %p901_p12 }
  0x1b   : > { %p904_p3 = pneg %p903_p0 }
  0x1d   : > { %p909_p7 = pnand %p907_p5, %p904_p3 }
  0x1f   : > { %912 = shalt.err (!%p909_p7)
}
  0x20   : > { %s913_s9 = scalar_lea.vmem %s146_s26, 512  ;;  %p921_p1 = scmp.lt.s32.totalorder %s146_s26, %s146_s26 }
  0x21   : > { %p914_p9 = scmp.ne.s32.totalorder %s146_s26, %s913_s9  ;;  %p922_p4 = scmp.lt.s32.totalorder %s913_s9, %s913_s9 }
  0x23   : > { %p916_p10 = pnand %p914_p9, %p902_p13  ;;  %p923_p8 = por %p922_p4, %p921_p1 }
  0x25   : > { %p917_p6 = pneg %p916_p10 }
  0x27   : > { %p924_p2 = pnand %p923_p8, %p917_p6 }
  0x29   : > { %927 = shalt.err (!%p924_p2)
}
  0x2a   : > { %s1047_s10 = smov 128   ;;  %s1048_s11 = smov 8  }
  0x2b   : > { %796 = dma.hbm_to_vmem [thread:$0]  (!%p1142_p11), %s1317_s1, 512, %s146_s26, [#allocation6], %s1047_s10, %s1047_s10, %s1048_s11  }
  0x2c   : > { %p34_p1 = scmp.ge.s32.totalorder %s32_s28, 2  ;;  %s39_s25 = sadd.s32 1, %s1032_s14 }
  0x2d   : > { %p46_p2 = scmp.ne.s32.totalorder %s1032_s14, %s1028_s13  ;;  %p47_p4 = scmp.eq.s32.totalorder %s1044_s17, 0 }
  0x2e   : > { %s1345_s28 = smov (%p34_p1, %s32_s28), 0  ;;  %p1331_p8 = scmp.ne.s32.totalorder %s1325_s21, 0 }
  0x2f   : > { %p1169_p6 = por %p47_p4, %p46_p2  ;;  %s36_s27 = ssub.s32 %s1040_s16, %s1345_s28 }
  0x30   : > { %p1175_p10 = por %p1331_p8, %p46_p2  ;;  %p806_p12 = scmp.lt.s32.totalorder %s1044_s17, 2 }
  0x31   : > { %p37_p11 = scmp.eq.s32.totalorder %s36_s27, 0  ;;  %s162_s26 = sand.u32 1, %s1032_s14  }
  0x32   : > { %s709_s4 = sshll.u32 %s162_s26, 5  ;;  %s725_s6 = sshll.u32 %s1040_s16, 9 }
  0x33   : > { %s1184_s5 = scalar_select %p37_p11, %s1032_s14, %s39_s25  }
  0x34   : > { %s1190_s9 = scalar_lea.hbm %s1316_s0, %s725_s6  ;;  %s166_s21 = scalar_lea.vmem [#allocation2], %s709_s4 }
  0x35   : > { %s173_s10 = sshll.u32 %s166_s21, 4  ;;  %p1196_p13 = pnand %p806_p12, %p1169_p6  ;;  %s1192_s10 = int_to_ptr.vmem [resolvable:$true] %s173_s10 }
  0x36   : > { %s1200_s18 = scalar_lea.sflag [#allocation3], %s162_s26  ;;  %s928_s19 = scalar_lea.hbm %s1190_s9, 512 }
  0x37   : > { %p929_p0 = scmp.ne.s32.totalorder %s1190_s9, %s928_s19  ;;  %p930_p3 = pneg %p1196_p13 }
  0x38   : > { %s933_s29 = scalar_lea.hbm %s1316_s0, 1024  ;;  %p934_p9 = scmp.lt.u32.totalorder %s1190_s9, %s1316_s0 }
  0x39   : > { %p931_p5 = pnand %p930_p3, %p929_p0  ;;  %p935_p1 = scmp.lt.u32.totalorder %s933_s29, %s928_s19 }
  0x3a   : > { %p937_p4 = scmp.lt.u32.totalorder %s928_s19, %s1190_s9 }
  0x3b   : > { %p932_p7 = pneg %p931_p5  ;;  %p936_p2 = por %p935_p1, %p934_p9 }
  0x3d   : > { %p938_p6 = por %p937_p4, %p936_p2 }
  0x3f   : > { %p939_p8 = pnand %p938_p6, %p932_p7 }
  0x41   : > { %942 = shalt.err (!%p939_p8)
}
  0x42   : > { %s943_s26 = scalar_lea.vmem %s1192_s10, 512  ;;  %s1049_s7 = smov [#allocation2]  }
  0x43   : > { %p944_p12 = scmp.ne.s32.totalorder %s1192_s10, %s943_s26  ;;  %s948_s8 = sshll.u32 %s1049_s7, 4  ;;  %s949_s8 = int_to_ptr.vmem [resolvable:$false] %s948_s8 }
  0x44   : > { %s950_s21 = scalar_lea.vmem %s949_s8, 1024  ;;  %p951_p5 = scmp.lt.s32.totalorder %s1192_s10, %s949_s8 }
  0x45   : > { %p946_p11 = pnand %p944_p12, %p930_p3  ;;  %p952_p9 = scmp.lt.s32.totalorder %s950_s21, %s943_s26 }
  0x47   : > { %p947_p0 = pneg %p946_p11  ;;  %p953_p1 = por %p952_p9, %p951_p5 }
  0x49   : > { %p954_p2 = pnand %p953_p1, %p947_p0 }
  0x4b   : > { %957 = shalt.err (!%p954_p2)
}
  0x4c   : > { %s1050_s19 = smov 256   ;;  %s1051_s25 = smov 16  }
  0x4d   : > { %800 = dma.hbm_to_vmem [thread:$0]  (!%p1196_p13), %s1190_s9, 512, %s1192_s10, %s1200_s18, %s1050_s19, %s1050_s19, %s1051_s25  }
  0x4e   : > { %p1334_p3 = scmp.ne.s32.totalorder %s1328_s24, 0 }
  0x4f   : > { %s1231_s27 = sand.u32 (!%p1334_p3), 1, %s1028_s13   ;;  %p1335_p7 = scmp.ne.s32.totalorder (!%p1334_p3), %s1326_s22, 0 }
  0x50   : > { %185 = sbr.rel (%p1334_p3) target bundleno = 772 (0x304), region = 32  ;;  %s713_s29 = sshll.u32 (!%p1334_p3), %s1231_s27, 5 }
  0x51   : > { %s188_s4 = scalar_lea.sflag (!%p1334_p3), [#allocation3], %s1231_s27  ;;  %s191_s6 = scalar_lea.vmem (!%p1334_p3), [#allocation2], %s713_s29 }
  0x57   : > { %1011 = dma.done.wait (%p1335_p7), %s188_s4, 512  }
  0x58   : > { %1013 = vsyncadd (%p1335_p7), %s188_s4, 4294966784  ;;  %p1336_p4 = scmp.ne.s32.totalorder %s1324_s20, 0 }
  0x5a   : > { %1015 = dma.done.wait (%p1336_p4), [#allocation6], 512  }
  0x5b   : > { %1017 = vsyncadd (%p1336_p4), [#allocation6], 4294966784  ;;  %v1052_v0 = vmov 0.0|0.0   ;;  %vm1053_vm0 = vmmov 0   ;;  %v1054_v1 = vmov 0.0   ;;  %v218_v2 = vld [vmem:[%s191_s6] sm:$0xff] }
  0x5c   : > { %766 = vmatprep.subr.bf16.mxu1 %v1052_v0  ;;  %772 = vmatprep.subr.bf16.mxu0 %v1052_v0  ;;  %v219_v3 = vld [vmem:[%s191_s6 + $0x8] sm:$0xff]  ;;  %v220_v4 = vld [vmem:[%s191_s6 + $0x10] sm:$0xff]  ;;  %v221_v6 = vld [vmem:[%s191_s6 + $0x18] sm:$0xff]  ;;  %s1055_s20 = smov 120   ;;  %s1056_s22 = smov 127   ;;  %vm223_vm1 = vcmask 130048  }
  0x5d   : > { %742 = vmatprep.mubr.msk.f32.mxu1 %vm1053_vm0, %v1054_v1  ;;  %756 = vmatprep.mubr.msk.f32.mxu0 %vm1053_vm0, %v1054_v1  ;;  %v878_v5 = vpack.i.bf16 %v219_v3, %v218_v2  ;;  %v767_v7 = vpack.c.bf16 %v220_v4, %v218_v2  ;;  %v883_v8 = vpack.i.bf16 %v221_v6, %v220_v4  ;;  %v222_v9 = vld [vmem:[#allocation5] sm:$0xff]  ;;  %s1057_s24 = smov 119   ;;  %vm313_vm2 = vcmask 1039360   ;;  %v300_v34 = vld [vmem:[#allocation5 + $0x8] sm:$0xff]  ;;  %v395_v35 = vld [vmem:[#allocation5 + $0x10] sm:$0xff]  ;;  %s715_s11 = sshll.u32 %s1231_s27, 3 }
  0x5e   : > { %vm404_vm3 = vcmask 982016   ;;  %vm495_vm4 = vcmask 973824   ;;  %v486_v39 = vld [vmem:[#allocation5 + $0x18] sm:$0xff]  ;;  %v720_v43 = vld [vmem:[%s1318_s2] ss:$0 sm:$0xff]  ;;  %s722_s18 = sshll.u32 %s1036_s15, 7 }
  0x5f   : > { %879 = vrot.lane.b32.xlu1 %v878_v5, %s1055_s20  ;;  %869 = vrot.lane.b32.xlu0 %v878_v5, %s1056_s22  ;;  %s217_s26 = scalar_lea.vmem [#allocation7], %s715_s11  ;;  %s1267_s19 = scalar_lea.hbm %s1319_s3, %s722_s18 }
  0x60   : > { %768 = vmatpush3.bf16.msra.mxu1 %v767_v7  ;;  %s615_s7 = sshll.u32 %s217_s26, 4  ;;  %s601_s25 = scalar_lea.sflag [#allocation4], %s1231_s27  ;;  %s1269_s7 = int_to_ptr.vmem [resolvable:$true] %s615_s7 }
  0x61   : > { %769 = vmatprep.subr.bf16.mxu1 %v1052_v0  ;;  %s958_s29 = scalar_lea.vmem %s1269_s7, 128  ;;  %s1058_s15 = smov [#allocation7]  }
  0x62   : > { %p959_p13 = scmp.ne.s32.totalorder %s1269_s7, %s958_s29  ;;  %s962_s4 = sshll.u32 %s1058_s15, 4  ;;  %s963_s4 = int_to_ptr.vmem [resolvable:$false] %s962_s4 }
  0x63   : > { %884 = vrot.lane.b32.xlu1 %v883_v8, %s1055_s20  ;;  %874 = vrot.lane.b32.xlu0 %v883_v8, %s1056_s22  ;;  %s964_s6 = scalar_lea.vmem %s963_s4, 256  ;;  %p965_p12 = scmp.lt.s32.totalorder %s1269_s7, %s963_s4 }
  0x64   : > { %743 = vmatmul.mubr.msk.f32.vlgmr.msra.gmra.mrb[0].mxu1 %vm223_vm1, %v222_v9  ;;  %p960_p6 = pnand %p959_p13, %p1175_p10  ;;  %p966_p11 = scmp.lt.s32.totalorder %s964_s6, %s958_s29 }
  0x65   : > { %749 = vmatprep.mubr.msk.f32.mxu1 %vm1053_vm0, %v1054_v1 }
  0x66   : > { %p961_p8 = pneg %p960_p6  ;;  %p967_p0 = por %p966_p11, %p965_p12 }
  0x67   : > { %894 = vrot.lane.b32.xlu1 %v883_v8, %s1057_s24  ;;  %889 = vrot.lane.b32.xlu0 %v878_v5, %s1057_s24 }
  0x68   : > { %p968_p5 = pnand %p967_p0, %p961_p8 }
  0xd1   : > { %v880_v10 = vpop.permute.xlu1 %879  ;;  %v870_v11 = vpop.permute.xlu0 %869 }
  0xd2   : > { %v872_v12 = vunpack.i.h.bf16 %v870_v11  ;;  %v871_v13 = vunpack.i.l.bf16 %v870_v11  ;;  %v882_v14 = vunpack.i.h.bf16 %v880_v10  ;;  %v881_v15 = vunpack.i.l.bf16 %v880_v10 }
  0xd4   : > { %v314_v16 = vsel %vm313_vm2, %v871_v13, %v872_v12  ;;  %v405_v24 = vsel %vm404_vm3, %v881_v15, %v882_v14 }
  0xd5   : > { %v885_v17 = vpop.permute.xlu1 %884  ;;  %v875_v18 = vpop.permute.xlu0 %874 }
  0xd6   : > { %v887_v19 = vunpack.i.h.bf16 %v885_v17  ;;  %v886_v20 = vunpack.i.l.bf16 %v885_v17  ;;  %v877_v21 = vunpack.i.h.bf16 %v875_v18  ;;  %v876_v22 = vunpack.i.l.bf16 %v875_v18 }
  0xd8   : > { %v315_v23 = vsel %vm313_vm2, %v876_v22, %v877_v21  ;;  %v406_v25 = vsel %vm404_vm3, %v886_v20, %v887_v19 }
  0xd9   : > { %v770_v26 = vpack.c.bf16 %v315_v23, %v314_v16  ;;  %v773_v27 = vpack.c.bf16 %v406_v25, %v405_v24  ;;  %v895_v28 = vpop.permute.xlu1 %894  ;;  %v890_v29 = vpop.permute.xlu0 %889 }
  0xda   : > { %v897_v30 = vunpack.i.h.bf16 %v895_v28  ;;  %v896_v31 = vunpack.i.l.bf16 %v895_v28  ;;  %v892_v32 = vunpack.i.h.bf16 %v890_v29  ;;  %v891_v33 = vunpack.i.l.bf16 %v890_v29 }
  0xdb   : > { %771 = vmatpush3.bf16.msra.mxu1 %v770_v26  ;;  %774 = vmatpush3.bf16.msra.mxu0 %v773_v27 }
  0xdc   : > { %v497_v36 = vsel %vm495_vm4, %v896_v31, %v897_v30  ;;  %v496_v37 = vsel %vm495_vm4, %v891_v33, %v892_v32  ;;  %775 = vmatprep.subr.bf16.mxu0 %v1052_v0 }
  0xdd   : > { %v776_v38 = vpack.c.bf16 %v497_v36, %v496_v37 }
  0xde   : > { %750 = vmatmul.mubr.msk.f32.vlgmr.msra.gmra.mrb[0].mxu1 %vm223_vm1, %v300_v34  ;;  %757 = vmatmul.mubr.msk.f32.vlgmr.msra.gmra.mrb[0].mxu0 %vm223_vm1, %v395_v35 }
  0xdf   : > { %777 = vmatpush3.bf16.msra.mxu0 %v776_v38  ;;  %763 = vmatprep.mubr.msk.f32.mxu0 %vm1053_vm0, %v1054_v1 }
  0xe6   : > { %764 = vmatmul.mubr.msk.f32.vlgmr.msra.gmra.mrb[0].mxu0 %vm223_vm1, %v486_v39 }
 0x1b1   : > { %v387_v40 = vpop.f32.mrb[0].mxu1 }
 0x1b2   : > { %v751_v41 = vpop.f32.mrb[1].mxu1 }
 0x1b9   : > { %v569_v42 = vpop.f32.mrb[0].mxu0 }
 0x1ba   : > { %v780_v44 = vadd.f32 %v569_v42, %v387_v40  ;;  %v765_v45 = vpop.f32.mrb[1].mxu0 }
 0x1bc   : > { %v583_v46 = vmul.f32 %v780_v44, %v720_v43 }
 0x1be   : > { %584 = vadd.xlane.f32.xlu0 %v583_v46 }
 0x24b   : > { %v585_v47 = vpop.xlane.xlu0 %584 }
 0x24c   : > { %v586_v48 = vmul.f32 0.020408163, %v585_v47 }
 0x24e   : > { %v587_v49 = vsub.f32 %v780_v44, %v586_v48 }
 0x250   : > { %v588_v50 = vmul.f32 %v587_v49, %v587_v49 }
 0x252   : > { %v589_v51 = vmul.f32 %v720_v43, %v588_v50 }
 0x254   : > { %590 = vadd.xlane.f32.xlu1 %v589_v51 }
 0x2e1   : > { %v591_v52 = vpop.xlane.xlu1 %590 }
 0x2e2   : > { %v592_v53 = vmul.f32 0.020408163, %v591_v52 }
 0x2e4   : > { %v593_v54 = vadd.f32 1e-05, %v592_v53 }
 0x2e6   : > { %898 = vrsqrt.f32 %v593_v54 }
 0x2f0   : > { %v899_v55 = vpop.eup %898 }
 0x2f1   : > { %v595_v56 = vmul.f32 %v899_v55, %v587_v49 }
 0x2f3   : > { %v597_v57 = vmul.f32 0.01, %v595_v56  ;;  %vm596_vm5 = vcmp.ge.f32.partialorder %v595_v56, 0.0 }
 0x2f5   : > { %v598_v58 = vsel %vm596_vm5, %v595_v56, %v597_v57 }
 0x2f6   : > { %599 = vst [vmem:[%s217_s26] sm:$0xff] %v598_v58 }
 0x2f7   : > { %971 = shalt.err (!%p968_p5)
}
 0x2f8   : > { %s972_s27 = scalar_lea.hbm %s1267_s19, 128  ;;  %s976_s24 = scalar_lea.hbm %s1319_s3, 256 }
 0x2f9   : > { %p973_p9 = scmp.ne.s32.totalorder %s1267_s19, %s972_s27  ;;  %p977_p3 = scmp.lt.u32.totalorder %s1267_s19, %s1319_s3 }
 0x2fa   : > { %p978_p7 = scmp.lt.u32.totalorder %s976_s24, %s972_s27  ;;  %p980_p13 = scmp.lt.u32.totalorder %s972_s27, %s1267_s19 }
 0x2fb   : > { %p974_p1 = pnand %p973_p9, %p1175_p10 }
 0x2fc   : > { %p979_p4 = por %p978_p7, %p977_p3 }
 0x2fd   : > { %p975_p2 = pneg %p974_p1 }
 0x2fe   : > { %p981_p6 = por %p980_p13, %p979_p4 }
 0x300   : > { %p982_p8 = pnand %p981_p6, %p975_p2 }
 0x302   : > { %985 = shalt.err (!%p982_p8)
}
 0x303   : > { %791 = dma.vmem_to_hbm [thread:$0]  (%p1175_p10), %s1269_s7, 128, %s1267_s19, %s601_s25  }
 0x304 PF: > { %s627_s11 = sand.u32 1, %s1024_s12   ;;  %p1337_p12 = scmp.ne.s32.totalorder %s1327_s23, 0 }
 0x305   : > { %p1338_p11 = scmp.ge.s32.totalorder %s1044_s17, 2  ;;  %s628_s18 = scalar_lea.sflag [#allocation4], %s627_s11 }
 0x307   : > { %p802_p0 = pnand %p1338_p11, %p1337_p12 }
 0x309   : > { %1019 = dma.done.wait (!%p802_p0), %s628_s18, 128  }
 0x30a   : > { %1021 = vsyncadd (!%p802_p0), %s628_s18, 4294967168  ;;  %s20_s17 = sadd.s32 1, %s1044_s17   ;;  %s1339_s12 = smov %s1028_s13 }
 0x30b   : > { %p17_p5 = scmp.ge.s32.totalorder %s20_s17, 4   ;;  %s1340_s13 = smov %s1032_s14 }
 0x30c   : > { %s1341_s14 = smov %s1184_s5  ;;  %s1342_s15 = smov %s1040_s16 }
 0x30d   : > { %s1343_s16 = smov %s1345_s28  ;;  %19 = sbr.rel (!%p17_p5) target bundleno = 7 (0x7), region = 84 }
 0x314   :  { %633 = vsyncpa [#allocation3], 1 }
 0x315   :  { %635 = vsyncpa [#allocation3 + $0x1], 1 }
 0x316   :  { %636 = vsyncpa [#allocation6], 1 }
 0x317   :  { %637 = vsyncpa [#allocation4], 1 }
 0x318   :  { %639 = vsyncpa [#allocation4 + $0x1], 1 }

</bundles_post_ra>
